<compile_context>
chip_gen: v5e
topology: v5e:2x2
jax: 0.10.0
libtpu: 0.0.40
codegen_flags: <defaults>
</compile_context>

<pallas_src>
import functools

import jax
import jax.numpy as jnp
from jax.experimental import pallas as pl
from jax.experimental.pallas import tpu as pltpu

LANE = 128


def _round_up(n, m):
    return ((n + m - 1) // m) * m


def _block_b_cap():
    # v5e/v5p: 128x128 MXU + 1 vst slot -> cap 128.  v6e/v7x: 256-wide MXU -> 256.
    try:
        kind = jax.devices()[0].device_kind.lower()
    except Exception:  # pragma: no cover - no devices at trace time
        return 256
    return 128 if "v5" in kind else 256


def mlp4_kernel(x_ref, w1_ref, w2_ref, w3_ref, w4_ref, o_ref):
    # One batch tile: 4 fused matmuls + ReLUs.  Weights are VMEM-resident
    # (whole-array specs, single copy).  Matmul operands are the weights'
    # compute dtype (bf16 by default); accumulation is always f32 on the MXU.
    cdt = w1_ref.dtype
    h = jnp.dot(x_ref[...].astype(cdt), w1_ref[...],
                preferred_element_type=jnp.float32)
    h = jnp.maximum(h, 0.0)
    h = jnp.dot(h.astype(cdt), w2_ref[...], preferred_element_type=jnp.float32)
    h = jnp.maximum(h, 0.0)
    h = jnp.dot(h.astype(cdt), w3_ref[...], preferred_element_type=jnp.float32)
    h = jnp.maximum(h, 0.0)
    h = jnp.dot(h.astype(cdt), w4_ref[...], preferred_element_type=jnp.float32)
    h = jnp.maximum(h, 0.0)
    o_ref[...] = h.astype(o_ref.dtype)  # (block_b, output_dim), no padding


def prepare_params(w1, w2, w3, w4, *, compute_dtype=jnp.bfloat16):
    """One-time weight preparation (hoisted out of the per-call path).

    Takes PyTorch nn.Linear convention (out_dim, in_dim) weights, transposes
    them to (in_dim, out_dim), zero-pads the three hidden feature dims (and
    the matching input dim of the following layer) up to a multiple of 128
    lanes, and casts to `compute_dtype` (bf16 default; pass jnp.float32 for
    exact PyTorch parity).  The final output dim is NOT padded so the kernel
    can store it directly.  ReLU preserves zeros, so the result on the real
    features is identical to the unpadded computation.

    Returns (w1p, w2p, w3p, w4p).
    """
    hid1, in_dim = w1.shape
    hid2, hid1_b = w2.shape
    hid3, hid2_b = w3.shape
    out_dim, hid3_b = w4.shape
    assert (hid1, hid2, hid3) == (hid1_b, hid2_b, hid3_b), "inconsistent weight shapes"

    h1p = _round_up(hid1, LANE)
    h2p = _round_up(hid2, LANE)
    h3p = _round_up(hid3, LANE)

    def pad_t(w, rows, cols):
        wt = w.T  # (in, out)
        r, c = wt.shape
        wt = jnp.pad(wt, ((0, rows - r), (0, cols - c)))
        if compute_dtype is not None:
            wt = wt.astype(compute_dtype)
        return wt

    w1p = pad_t(w1, in_dim, h1p)     # (in_dim, h1p)
    w2p = pad_t(w2, h1p, h2p)        # (h1p,   h2p)
    w3p = pad_t(w3, h2p, h3p)        # (h2p,   h3p)
    w4p = pad_t(w4, h3p, out_dim)    # (h3p,   out_dim)  -- output dim unpadded
    return (w1p, w2p, w3p, w4p)


def generative_4l_forward(x, params, *, block_b=None):
    """x: (B, input_dim) f32/bf16. params: output of prepare_params."""
    w1p, w2p, w3p, w4p = params
    B, in_dim = x.shape
    assert w1p.shape[0] == in_dim, "x feature dim does not match W1"
    out_dim = w4p.shape[1]

    # Batch tiling: block rows must be a multiple of 8 sublanes (or equal B).
    # Cap 256 (128 on v5*) so the (block_b, 128) f32 intermediates stay inside
    # the 64-vreg file; target >=4 grid steps for B >= 32 (>=2 per v7x core so
    # the x-block DMA overlaps compute), >=2 steps for B >= 16.
    if block_b is None:
        if B <= 8:
            block_b = B
        else:
            target_steps = 4 if B >= 32 else 2
            block_b = min(_block_b_cap(), _round_up(-(-B // target_steps), 8))
    block_b = max(1, int(block_b))
    if block_b < B:
        block_b = _round_up(block_b, 8)
    if block_b >= B:
        block_b = B
    grid = (pl.cdiv(B, block_b),)
    # NOTE: if B % block_b != 0, Pallas reads past the end of x for the last
    # block and masks the out-of-range rows on writeback; the garbage rows are
    # dropped, so results are correct (just a little wasted MXU work).

    itemsize = x.dtype.itemsize
    flops = 2 * B * (in_dim * w1p.shape[1]
                     + w1p.shape[1] * w2p.shape[1]
                     + w2p.shape[1] * w3p.shape[1]
                     + w3p.shape[1] * out_dim)
    weight_bytes = sum(w.size * w.dtype.itemsize for w in params)
    bytes_accessed = B * in_dim * itemsize + weight_bytes + B * out_dim * itemsize

    # VMEM budget: resident weights (single copy) + double-buffered x/out
    # blocks + generous headroom for the f32 intermediates/spill.
    max_w = max(w1p.shape[1], w2p.shape[1], w3p.shape[1], out_dim)
    vmem_limit = min(
        max(weight_bytes
            + 2 * block_b * (in_dim + out_dim) * itemsize
            + 4 * block_b * max_w * 4
            + (2 << 20),
            32 << 20),
        128 << 20)

    # Weights: whole-array, VMEM-resident (single copy, no per-step block
    # index, no double buffering).
    wspec = pl.BlockSpec(memory_space=pltpu.MemorySpace.VMEM)

    return pl.pallas_call(
        mlp4_kernel,
        out_shape=jax.ShapeDtypeStruct((B, out_dim), x.dtype),
        grid_spec=pltpu.PrefetchScalarGridSpec(
            num_scalar_prefetch=0,
            grid=grid,
            in_specs=[
                pl.BlockSpec((block_b, in_dim), lambda i: (i, 0)),
                wspec, wspec, wspec, wspec,
            ],
            # Direct (block_b, out_dim) store: masked vst for out_dim < 128,
            # but no post-kernel slice op / extra HBM pass.
            out_specs=pl.BlockSpec((block_b, out_dim), lambda i: (i, 0)),
        ),
        compiler_params=pltpu.CompilerParams(
            dimension_semantics=("parallel",),
            vmem_limit_bytes=int(vmem_limit),
        ),
        cost_estimate=pl.CostEstimate(
            flops=flops, transcendentals=0, bytes_accessed=int(bytes_accessed)),
    )(x, w1p, w2p, w3p, w4p)


def reference_forward(x, w1, w2, w3, w4):
    h = jax.nn.relu(x @ w1.T)
    h = jax.nn.relu(h @ w2.T)
    h = jax.nn.relu(h @ w3.T)
    h = jax.nn.relu(h @ w4.T)
    return h


if __name__ == "__main__":
    # Small shapes consistent with the module: input_dim=32, hid1=64,
    # hid2=48, hid3=64, output_dim=32, batch=8.
    B, input_dim = 8, 32
    hid1, hid2, hid3, output_dim = 64, 48, 64, 32

    key = jax.random.PRNGKey(0)
    kx, k1, k2, k3, k4 = jax.random.split(key, 5)

    x = jax.random.normal(kx, (B, input_dim), dtype=jnp.float32)
    # Deterministic synthetic weights, PyTorch nn.Linear convention (out, in).
    w1 = jax.random.normal(k1, (hid1, input_dim), dtype=jnp.float32) * 0.1
    w2 = jax.random.normal(k2, (hid2, hid1), dtype=jnp.float32) * 0.1
    w3 = jax.random.normal(k3, (hid3, hid2), dtype=jnp.float32) * 0.1
    w4 = jax.random.normal(k4, (output_dim, hid3), dtype=jnp.float32) * 0.1

    ref = reference_forward(x, w1, w2, w3, w4)
    fwd = jax.jit(functools.partial(generative_4l_forward))

    # Default path: bf16 MXU operands, f32 accumulation (tolerance gated on dtype).
    params_bf16 = prepare_params(w1, w2, w3, w4)  # compute_dtype=bf16 default
    params_bf16 = jax.tree_util.tree_map(jax.block_until_ready, params_bf16)
    out_bf16 = jax.block_until_ready(fwd(x, params_bf16))
    assert out_bf16.shape == (B, output_dim)
    assert jnp.allclose(out_bf16, ref, atol=2e-2, rtol=2e-2), "bf16 path mismatch"

    # Exact-parity path: f32 operands, tight tolerance vs. the PyTorch-style ref.
    params_f32 = prepare_params(w1, w2, w3, w4, compute_dtype=jnp.float32)
    params_f32 = jax.tree_util.tree_map(jax.block_until_ready, params_f32)
    out_f32 = jax.block_until_ready(fwd(x, params_f32))
    assert out_f32.shape == (B, output_dim)
    assert jnp.allclose(out_f32, ref, atol=1e-5, rtol=1e-5), "f32 path mismatch"

    print("KERNEL_OK")
</pallas_src>

<mosaic_0001>
module attributes {stable_mosaic.version = 11 : i64} {
  func.func @mlp4_kernel(%arg0: i32, %arg1: memref<8x32xf32, #tpu.memory_space<vmem>>, %arg2: memref<32x128xbf16, #tpu.memory_space<vmem>>, %arg3: memref<128x128xbf16, #tpu.memory_space<vmem>>, %arg4: memref<128x128xbf16, #tpu.memory_space<vmem>>, %arg5: memref<128x32xbf16, #tpu.memory_space<vmem>>, %arg6: memref<8x32xf32, #tpu.memory_space<vmem>>) attributes {dimension_semantics = [#tpu.dimension_semantics<parallel>], iteration_bounds = array<i64: 1>, scalar_prefetch = 0 : i64, scratch_operands = 0 : i64, tpu.core_type = #tpu.core_type<tc>, window_params = [{transform_indices = @transform_0, window_bounds = array<i64: 8, 32>}, {pipeline_mode = #tpu.pipeline_mode<synchronous>, transform_indices = @transform_1, window_bounds = array<i64: 32, 128>}, {pipeline_mode = #tpu.pipeline_mode<synchronous>, transform_indices = @transform_2, window_bounds = array<i64: 128, 128>}, {pipeline_mode = #tpu.pipeline_mode<synchronous>, transform_indices = @transform_3, window_bounds = array<i64: 128, 128>}, {pipeline_mode = #tpu.pipeline_mode<synchronous>, transform_indices = @transform_4, window_bounds = array<i64: 128, 32>}, {transform_indices = @transform_5, window_bounds = array<i64: 8, 32>}]} {
    %c0 = arith.constant 0 : index
    %c0_0 = arith.constant 0 : index
    %0 = vector.load %arg1[%c0, %c0_0] : memref<8x32xf32, #tpu.memory_space<vmem>>, vector<8x32xf32>
    %1 = arith.truncf %0 : vector<8x32xf32> to vector<8x32xbf16>
    %c0_1 = arith.constant 0 : index
    %c0_2 = arith.constant 0 : index
    %2 = vector.load %arg2[%c0_1, %c0_2] : memref<32x128xbf16, #tpu.memory_space<vmem>>, vector<32x128xbf16>
    %cst = arith.constant dense<0.000000e+00> : vector<8x128xf32>
    %3 = tpu.matmul %1, %2, %cst {dimension_numbers = #tpu.dot_dimension_numbers<[1], [0], [0], [1], [0, 0, 1, 1], [], []>} : vector<8x32xbf16>, vector<32x128xbf16>, vector<8x128xf32> -> vector<8x128xf32>
    %cst_3 = arith.constant 0.000000e+00 : f32
    %4 = vector.broadcast %cst_3 : f32 to vector<8x128xf32>
    %5 = arith.maximumf %3, %4 : vector<8x128xf32>
    %6 = arith.truncf %5 : vector<8x128xf32> to vector<8x128xbf16>
    %c0_4 = arith.constant 0 : index
    %c0_5 = arith.constant 0 : index
    %7 = vector.load %arg3[%c0_4, %c0_5] : memref<128x128xbf16, #tpu.memory_space<vmem>>, vector<128x128xbf16>
    %cst_6 = arith.constant dense<0.000000e+00> : vector<8x128xf32>
    %8 = tpu.matmul %6, %7, %cst_6 {dimension_numbers = #tpu.dot_dimension_numbers<[1], [0], [0], [1], [0, 0, 1, 1], [], []>} : vector<8x128xbf16>, vector<128x128xbf16>, vector<8x128xf32> -> vector<8x128xf32>
    %cst_7 = arith.constant 0.000000e+00 : f32
    %9 = vector.broadcast %cst_7 : f32 to vector<8x128xf32>
    %10 = arith.maximumf %8, %9 : vector<8x128xf32>
    %11 = arith.truncf %10 : vector<8x128xf32> to vector<8x128xbf16>
    %c0_8 = arith.constant 0 : index
    %c0_9 = arith.constant 0 : index
    %12 = vector.load %arg4[%c0_8, %c0_9] : memref<128x128xbf16, #tpu.memory_space<vmem>>, vector<128x128xbf16>
    %cst_10 = arith.constant dense<0.000000e+00> : vector<8x128xf32>
    %13 = tpu.matmul %11, %12, %cst_10 {dimension_numbers = #tpu.dot_dimension_numbers<[1], [0], [0], [1], [0, 0, 1, 1], [], []>} : vector<8x128xbf16>, vector<128x128xbf16>, vector<8x128xf32> -> vector<8x128xf32>
    %cst_11 = arith.constant 0.000000e+00 : f32
    %14 = vector.broadcast %cst_11 : f32 to vector<8x128xf32>
    %15 = arith.maximumf %13, %14 : vector<8x128xf32>
    %16 = arith.truncf %15 : vector<8x128xf32> to vector<8x128xbf16>
    %c0_12 = arith.constant 0 : index
    %c0_13 = arith.constant 0 : index
    %17 = vector.load %arg5[%c0_12, %c0_13] : memref<128x32xbf16, #tpu.memory_space<vmem>>, vector<128x32xbf16>
    %cst_14 = arith.constant dense<0.000000e+00> : vector<8x32xf32>
    %18 = tpu.matmul %16, %17, %cst_14 {dimension_numbers = #tpu.dot_dimension_numbers<[1], [0], [0], [1], [0, 0, 1, 1], [], []>} : vector<8x128xbf16>, vector<128x32xbf16>, vector<8x32xf32> -> vector<8x32xf32>
    %cst_15 = arith.constant 0.000000e+00 : f32
    %19 = vector.broadcast %cst_15 : f32 to vector<8x32xf32>
    %20 = arith.maximumf %18, %19 : vector<8x32xf32>
    %c0_16 = arith.constant 0 : index
    %c0_17 = arith.constant 0 : index
    %21 = vector.load %arg6[%c0_16, %c0_17] : memref<8x32xf32, #tpu.memory_space<vmem>>, vector<8x32xf32>
    tpu.vector_store %arg6[%c0_16, %c0_17], %20 {strides = array<i32>} : memref<8x32xf32, #tpu.memory_space<vmem>>, vector<8x32xf32>,
    return
  }
  func.func @transform_0(%arg0: i32) -> (i32, i32) {
    %c0_i32 = arith.constant 0 : i32
    %c0_i32_0 = arith.constant 0 : i32
    return %arg0, %c0_i32 : i32, i32
  }
  func.func @transform_1(%arg0: i32) -> (i32, i32) {
    %c0_i32 = arith.constant 0 : i32
    %c0_i32_0 = arith.constant 0 : i32
    %c0_i32_1 = arith.constant 0 : i32
    return %c0_i32, %c0_i32_0 : i32, i32
  }
  func.func @transform_2(%arg0: i32) -> (i32, i32) {
    %c0_i32 = arith.constant 0 : i32
    %c0_i32_0 = arith.constant 0 : i32
    %c0_i32_1 = arith.constant 0 : i32
    return %c0_i32, %c0_i32_0 : i32, i32
  }
  func.func @transform_3(%arg0: i32) -> (i32, i32) {
    %c0_i32 = arith.constant 0 : i32
    %c0_i32_0 = arith.constant 0 : i32
    %c0_i32_1 = arith.constant 0 : i32
    return %c0_i32, %c0_i32_0 : i32, i32
  }
  func.func @transform_4(%arg0: i32) -> (i32, i32) {
    %c0_i32 = arith.constant 0 : i32
    %c0_i32_0 = arith.constant 0 : i32
    %c0_i32_1 = arith.constant 0 : i32
    return %c0_i32, %c0_i32_0 : i32, i32
  }
  func.func @transform_5(%arg0: i32) -> (i32, i32) {
    %c0_i32 = arith.constant 0 : i32
    %c0_i32_0 = arith.constant 0 : i32
    return %arg0, %c0_i32 : i32, i32
  }
}

</mosaic_0001>

<bundles_post_ra>
// kernel: generative_4l_forward.1
= control target key start
LH: loop header
LB: loop body
LE: loop exit
PB: predicated region body
PF: predicated region fallthrough
CT: control target
= control target key end

     0   :  { %10 = vsyncpa [#allocation3], 0  ;;  %s658_s0 = inlined_call_operand.hbm [shape: f32[8,32], index: 0, kind: input, shape index: {}]   ;;  %s659_s1 = inlined_call_operand.vmem [shape: bf16[32,128], index: 1, kind: input, shape index: {}]   ;;  %s660_s2 = inlined_call_operand.vmem [shape: bf16[128,128], index: 2, kind: input, shape index: {}]   ;;  %s661_s3 = inlined_call_operand.hbm [shape: bf16[128,128], index: 3, kind: input, shape index: {}]   ;;  %s662_s4 = inlined_call_operand.vmem [shape: bf16[128,32], index: 4, kind: input, shape index: {}]   ;;  %s663_s5 = inlined_call_operand.hbm [shape: f32[8,32], index: 5, kind: output, shape index: {}]  }
   0x1   :  { %11 = vsyncpa [#allocation6], 0 }
   0x2   :  { %12 = vsyncpa [#allocation4], 0  ;;  %s18_s20 = sshll.u32 %s658_s0, 4  ;;  %s558_s21 = smov [#allocation2]   ;;  %s19_s20 = int_to_ptr.hbm [resolvable:$true] %s18_s20 }
   0x3   :  { %s20_s22 = sshll.u32 %s558_s21, 4  ;;  %s32_s25 = sshll.u32 %s661_s3, 4  ;;  %s21_s22 = int_to_ptr.vmem [resolvable:$true] %s20_s22  ;;  %s33_s25 = int_to_ptr.hbm [resolvable:$true] %s32_s25 }
   0x4   :  { %23 = dma.hbm_to_vmem [thread:$0]  %s19_s20, 128, %s21_s22, [#allocation3]  }
   0x5   :  { %s559_s26 = smov [#allocation5]   ;;  %s560_s28 = smov 64  }
   0x6   :  { %s34_s27 = sshll.u32 %s559_s26, 4  ;;  %s561_s29 = smov 4   ;;  %s35_s27 = int_to_ptr.vmem [resolvable:$true] %s34_s27 }
   0x7   :  { %40 = dma.hbm_to_vmem [thread:$0]  %s33_s25, 1024, %s35_s27, [#allocation6], %s560_s28, %s560_s28, %s561_s29  }
   0x8   :  { %552 = dma.done.wait [#allocation3], 128  }
   0x9   :  { %553 = vsyncadd [#allocation3], 4294967168 }
   0xa   :  { %554 = dma.done.wait [#allocation6], 1024  }
   0xb   :  { %555 = vsyncadd [#allocation6], 4294966272  ;;  %v450_v0 = vld [vmem:[%s659_s1 + $0x8] sm:$0xff]  ;;  %v458_v1 = vld [vmem:[%s660_s2 + $0x38] sm:$0xff]  ;;  %vm70_vm0 = vcmask 261120   ;;  %s562_s10 = smov [#allocation7]  }
   0xc   :  { %80 = vmatpush.bf16.msra.mxu0 %v450_v0  ;;  %v449_v2 = vld [vmem:[%s659_s1] sm:$0xff]  ;;  %153 = vmatpush.bf16.msra.mxu1 %v458_v1  ;;  %v457_v4 = vld [vmem:[%s660_s2 + $0x30] sm:$0xff]  ;;  %v456_v6 = vld [vmem:[%s660_s2 + $0x28] sm:$0xff]  ;;  %s331_s11 = sshll.u32 %s562_s10, 4  ;;  %s333_s14 = sshll.u32 %s663_s5, 4  ;;  %s332_s11 = int_to_ptr.vmem [resolvable:$true] %s331_s11  ;;  %s334_s14 = int_to_ptr.hbm [resolvable:$true] %s333_s14 }
   0xd   :  { %v52_v3 = vld [vmem:[#allocation2] sm:$0xff]  ;;  %v454_v8 = vld [vmem:[%s660_s2 + $0x18] sm:$0xff]  ;;  %v453_v9 = vld [vmem:[%s660_s2 + $0x10] sm:$0xff] }
   0xe   :  { %v53_v5 = vpack.c.bf16 %v52_v3, %v52_v3  ;;  %v455_v7 = vld [vmem:[%s660_s2 + $0x20] sm:$0xff]  ;;  %v452_v10 = vld [vmem:[%s660_s2 + $0x8] sm:$0xff]  ;;  %v465_v13 = vld [vmem:[#allocation5 + $0x30] sm:$0xff] }
   0xf   :  { %v451_v11 = vld [vmem:[%s660_s2] sm:$0xff]  ;;  %v464_v14 = vld [vmem:[#allocation5 + $0x28] sm:$0xff]  ;;  %v463_v15 = vld [vmem:[#allocation5 + $0x20] sm:$0xff] }
  0x10   :  { %81 = vmatpush.bf16.msra.mxu0 %v449_v2  ;;  %154 = vmatpush.bf16.msra.mxu1 %v457_v4  ;;  %v466_v12 = vld [vmem:[#allocation5 + $0x38] sm:$0xff]  ;;  %v461_v17 = vld [vmem:[#allocation5 + $0x10] sm:$0xff]  ;;  %v460_v18 = vld [vmem:[#allocation5 + $0x8] sm:$0xff] }
  0x11   :  { %232 = vmatpush.bf16.msra.mxu2 %v466_v12  ;;  %v462_v16 = vld [vmem:[#allocation5 + $0x18] sm:$0xff]  ;;  %v459_v23 = vld [vmem:[#allocation5] sm:$0xff]  ;;  %v474_v24 = vld [vmem:[%s662_s4 + $0x38] sm:$0xff] }
  0x12   :  { %311 = vmatpush.bf16.msra.mxu3 %v474_v24  ;;  %v473_v25 = vld [vmem:[%s662_s4 + $0x30] sm:$0xff]  ;;  %v472_v26 = vld [vmem:[%s662_s4 + $0x28] sm:$0xff]  ;;  %v471_v27 = vld [vmem:[%s662_s4 + $0x20] sm:$0xff] }
  0x13   :  { %352 = vmatmul.msk.bf16.vlgmr.msra.gmra.mxu0 %vm70_vm0, %v53_v5  ;;  %v470_v28 = vld [vmem:[%s662_s4 + $0x18] sm:$0xff]  ;;  %v469_v29 = vld [vmem:[%s662_s4 + $0x10] sm:$0xff]  ;;  %v468_v30 = vld [vmem:[%s662_s4 + $0x8] sm:$0xff] }
  0x14   :  { %155 = vmatpush.bf16.msra.mxu1 %v456_v6  ;;  %v467_v35 = vld [vmem:[%s662_s4] sm:$0xff] }
  0x15   :  { %233 = vmatpush.bf16.msra.mxu2 %v465_v13 }
  0x16   :  { %312 = vmatpush.bf16.msra.mxu3 %v473_v25 }
  0x18   :  { %156 = vmatpush.bf16.msra.mxu1 %v455_v7 }
  0x19   :  { %234 = vmatpush.bf16.msra.mxu2 %v464_v14 }
  0x1a   :  { %313 = vmatpush.bf16.msra.mxu3 %v472_v26 }
  0x1c   :  { %157 = vmatpush.bf16.msra.mxu1 %v454_v8 }
  0x1d   :  { %235 = vmatpush.bf16.msra.mxu2 %v463_v15 }
  0x1e   :  { %314 = vmatpush.bf16.msra.mxu3 %v471_v27 }
  0x20   :  { %158 = vmatpush.bf16.msra.mxu1 %v453_v9 }
  0x21   :  { %236 = vmatpush.bf16.msra.mxu2 %v462_v16 }
  0x22   :  { %315 = vmatpush.bf16.msra.mxu3 %v470_v28 }
  0x24   :  { %159 = vmatpush.bf16.msra.mxu1 %v452_v10 }
  0x25   :  { %237 = vmatpush.bf16.msra.mxu2 %v461_v17 }
  0x26   :  { %316 = vmatpush.bf16.msra.mxu3 %v469_v29 }
  0x28   :  { %160 = vmatpush.bf16.msra.mxu1 %v451_v11 }
  0x29   :  { %238 = vmatpush.bf16.msra.mxu2 %v460_v18 }
  0x2a   :  { %317 = vmatpush.bf16.msra.mxu3 %v468_v30 }
  0x2d   :  { %239 = vmatpush.bf16.msra.mxu2 %v459_v23 }
  0x2e   :  { %318 = vmatpush.bf16.msra.mxu3 %v467_v35 }
  0x90   :  { %v83_v19 = vpop.f32.mrf.mxu0 }
  0x91   :  { %v87_v20 = vmax.f32 %v83_v19, 0.0 }
  0x93   :  { %v88_v21 = vpack.c.bf16 %v87_v20, %v87_v20 }
  0x95   :  { %161 = vmatmul.bf16.vlgmr.msra.gmra.mxu1 %v88_v21 }
  0x98   :  { %v85_v22 = vpop.f32.mrf.mxu0 }
 0x112   :  { %v162_v31 = vpop.f32.mrf.mxu1 }
 0x113   :  { %v166_v32 = vmax.f32 %v162_v31, 0.0 }
 0x115   :  { %v167_v33 = vpack.c.bf16 %v166_v32, %v166_v32 }
 0x117   :  { %240 = vmatmul.bf16.vlgmr.msra.gmra.mxu2 %v167_v33 }
 0x11a   :  { %v164_v34 = vpop.f32.mrf.mxu1 }
 0x19a   :  { %v241_v36 = vpop.f32.mrf.mxu2 }
 0x19b   :  { %v245_v37 = vmax.f32 %v241_v36, 0.0 }
 0x19d   :  { %v246_v38 = vpack.c.bf16 %v245_v37, %v245_v37 }
 0x19f   :  { %319 = vmatmul.bf16.vlgmr.msra.gmra.mxu3 %v246_v38 }
 0x1a2   :  { %v243_v39 = vpop.f32.mrf.mxu2 }
 0x222   :  { %v320_v40 = vpop.f32.mrf.mxu3 }
 0x223   :  { %v324_v41 = vmax.f32 %v320_v40, 0.0 }
 0x225   :  { %325 = vst.msk [vmem:[#allocation7] sm:$0xff] %vm70_vm0, %v324_v41 }
 0x226   :  { %336 = dma.vmem_to_hbm [thread:$0]  %s332_s11, 128, %s334_s14, [#allocation4]  }
 0x22a   :  { %v322_v42 = vpop.f32.mrf.mxu3 }
 0x22b   :  { %556 = dma.done.wait [#allocation4], 128  }
 0x22c   :  { %557 = vsyncadd [#allocation4], 4294967168 }
 0x22d   :  { %341 = vsyncpa [#allocation3], 1 }
 0x22e   :  { %342 = vsyncpa [#allocation6], 1 }
 0x22f   :  { %343 = vsyncpa [#allocation4], 1 }

</bundles_post_ra>
